<compile_context>
chip_gen: v5e
topology: v5e:2x2
jax: 0.10.0
libtpu: 0.0.40
codegen_flags: <defaults>
</compile_context>

<pallas_src>
import jax
import jax.numpy as jnp
from jax.experimental import pallas as pl
from jax.experimental.pallas import tpu as pltpu

_MIB = 1024 * 1024


def _select_vmem_budget():
    """(vmem_limit_bytes, default tag tile) picked per TPU generation."""
    cap = None
    try:
        info = pltpu.get_tpu_info()
        for name in ("vmem_capacity_bytes", "vmem_bytes", "vmem_size_bytes"):
            v = getattr(info, name, None)
            if v:
                cap = int(v)
                break
    except Exception:
        cap = None
    if cap is not None and cap >= 100 * _MIB:
        # v5e / v6e: 128 MiB physical VMEM -> spend it on wide tag tiles.
        return 64 * _MIB, 32768
    # v7x (64 MiB physical) or unknown: conservative budget.
    return 32 * _MIB, 16384


def _initial_head_kernel(x_ref, wer_ref, be_ref, wc_ref, bc_ref,
                         emb_ref, logit_ref, pred_ref, emb_acc):
    # grid = (batch tiles, tag-stream halves [parallel], tag tiles [arbitrary])
    ti = pl.program_id(2)

    @pl.when(ti == 0)
    def _():
        # Fused GAP + embedding projection: W_e_rep already carries the 1/HW
        # pooling scale, so this is a single K = C*HW MXU matmul.
        x = x_ref[...].astype(jnp.float32)                        # [tb, C*HW]
        emb = jnp.dot(x, wer_ref[...],
                      preferred_element_type=jnp.float32) + be_ref[...]
        emb_acc[...] = emb
        # Single guarded store: the emb output block index is constant along
        # the arbitrary tag axis (resident in VMEM), so one store is enough.
        emb_ref[...] = emb[None].astype(emb_ref.dtype)

    # Classifier tile: bf16 weight stream, f32 accumulation on the MXU.
    emb16 = emb_acc[...].astype(jnp.bfloat16)                     # [tb, E]
    logits = jnp.dot(emb16, wc_ref[...],
                     preferred_element_type=jnp.float32)
    logits = logits + bc_ref[...].astype(jnp.float32)             # [tb, tn]
    logit_ref[...] = logits.astype(logit_ref.dtype)

    # InitialOnlyWrapper: init_prediction = sigmoid(init_logits).
    # sigmoid(x) = 0.5*(tanh(x/2)+1) -> one EUP push per element.
    pred_ref[...] = (0.5 * (jnp.tanh(0.5 * logits) + 1.0)).astype(pred_ref.dtype)


def make_initial_only_wrapper(w_embed, b_embed, w_cls, b_cls, *, spatial_hw,
                              tag_tile=None):
    """Builds a jitted forward(x_nchw) -> (init_embeddings, init_logits, init_prediction).

    Weight prep (pool-fused embedding weight, bf16 classifier stream, padding)
    is materialized once here, not per call.
    """
    H, W = spatial_hw
    HW = H * W
    C, E = w_embed.shape
    E2, T = w_cls.shape
    assert E2 == E

    vmem_limit, default_tag_tile = _select_vmem_budget()
    if tag_tile is None:
        tag_tile = default_tag_tile

    tn = T if T <= tag_tile else tag_tile          # full T, or lane-dense tile
    n_tag_tiles = pl.cdiv(T, tn)
    # Outer "parallel" split of the tag stream: on v7x each TensorCore takes
    # half of the W_c stream; on v5e/v6e (single TC) it runs sequentially.
    P = 2 if n_tag_tiles >= 2 else 1
    n_inner = pl.cdiv(n_tag_tiles, P)
    T_pad = P * n_inner * tn                       # every tag block is full-size

    # ---- one-time weight prep (amortized across calls) ----------------------
    # Expanded pooling+embedding weight: row (c*HW + s) -> w_embed[c] / HW.
    # NOTE: only valid while C*HW*E is small (128 KiB here); at real-backbone
    # sizes stream HW/C tiles with an accumulator instead.
    w_e_rep = jnp.repeat(w_embed.astype(jnp.float32), HW, axis=0) * (1.0 / HW)
    b_embed2 = b_embed.astype(jnp.float32).reshape(1, E)
    # bf16 stream for the dominant HBM traffic; zero-pad so all blocks are
    # in-bounds (padded columns produce logits=0 / pred=0.5, sliced away).
    w_cls_p = jnp.zeros((E, T_pad), jnp.bfloat16).at[:, :T].set(
        w_cls.astype(jnp.bfloat16))
    b_cls_p = jnp.zeros((1, T_pad), jnp.bfloat16).at[:, :T].set(
        b_cls.astype(jnp.bfloat16))

    def forward(x_nchw):
        B = x_nchw.shape[0]
        tb = B                        # tiny batch: one batch tile (axis kept for scaling)
        x2d = x_nchw.reshape(B, C * HW)            # lane-dense input slab
        grid = (pl.cdiv(B, tb), P, n_inner)

        out_shape = (
            jax.ShapeDtypeStruct((P, B, E), jnp.float32),    # per-half emb copy
            jax.ShapeDtypeStruct((B, T_pad), jnp.float32),   # init_logits
            jax.ShapeDtypeStruct((B, T_pad), jnp.float32),   # init_prediction
        )
        flops = 2 * B * (C * HW) * E * P + 2 * B * E * T_pad + 4 * B * T_pad
        bytes_accessed = (4 * (B * C * HW + C * HW * E + E)
                          + 2 * (E * T_pad + T_pad)
                          + 4 * (P * B * E + 2 * B * T_pad))

        emb_all, logits_p, pred_p = pl.pallas_call(
            _initial_head_kernel,
            out_shape=out_shape,
            grid_spec=pltpu.PrefetchScalarGridSpec(
                num_scalar_prefetch=0,
                grid=grid,
                in_specs=[
                    pl.BlockSpec((tb, C * HW), lambda b, p, t: (b, 0)),
                    pl.BlockSpec((C * HW, E), lambda b, p, t: (0, 0)),
                    pl.BlockSpec((1, E), lambda b, p, t: (0, 0)),
                    pl.BlockSpec((E, tn),
                                 lambda b, p, t: (0, p * n_inner + t)),
                    pl.BlockSpec((1, tn),
                                 lambda b, p, t: (0, p * n_inner + t)),
                ],
                out_specs=[
                    pl.BlockSpec((1, tb, E), lambda b, p, t: (p, b, 0)),
                    pl.BlockSpec((tb, tn),
                                 lambda b, p, t: (b, p * n_inner + t)),
                    pl.BlockSpec((tb, tn),
                                 lambda b, p, t: (b, p * n_inner + t)),
                ],
                scratch_shapes=[pltpu.VMEM((tb, E), jnp.float32)],
            ),
            compiler_params=pltpu.CompilerParams(
                dimension_semantics=("parallel", "parallel", "arbitrary"),
                vmem_limit_bytes=vmem_limit,
            ),
            cost_estimate=pl.CostEstimate(
                flops=flops, transcendentals=B * T_pad,
                bytes_accessed=bytes_accessed),
        )(x2d, w_e_rep, b_embed2, w_cls_p, b_cls_p)

        # TODO(synk): if callers only need embeddings + predictions, drop the
        # logits output (or emit it bf16) to trim the writeback stream.
        return emb_all[0], logits_p[:, :T], pred_p[:, :T]

    return jax.jit(forward)


def _reference(x_nchw, w_embed, b_embed, w_cls, b_cls):
    # Module semantics: GAP -> embed -> logits -> sigmoid, HIGHEST precision.
    pooled = jnp.mean(x_nchw.reshape(*x_nchw.shape[:2], -1), axis=-1)
    emb = jnp.dot(pooled, w_embed, precision=jax.lax.Precision.HIGHEST) + b_embed
    logits = jnp.dot(emb, w_cls, precision=jax.lax.Precision.HIGHEST) + b_cls
    return emb, logits, jax.nn.sigmoid(logits)


if __name__ == "__main__":
    B, C, H, W = 2, 4, 16, 16      # small NCHW image input, like PyTorch
    E, T = 32, 128                 # embedding dim, number of tags

    key = jax.random.PRNGKey(0)
    kx, kwe, kbe, kwc, kbc = jax.random.split(key, 5)
    x = jax.random.normal(kx, (B, C, H, W), dtype=jnp.float32)
    w_embed = 0.1 * jax.random.normal(kwe, (C, E), dtype=jnp.float32)
    b_embed = 0.1 * jax.random.normal(kbe, (E,), dtype=jnp.float32)
    w_cls = 0.1 * jax.random.normal(kwc, (E, T), dtype=jnp.float32)
    b_cls = 0.1 * jax.random.normal(kbc, (T,), dtype=jnp.float32)

    fwd = make_initial_only_wrapper(w_embed, b_embed, w_cls, b_cls,
                                    spatial_hw=(H, W))
    emb, logits, pred = fwd(x)
    jax.block_until_ready((emb, logits, pred))

    r_emb, r_logits, r_pred = _reference(x, w_embed, b_embed, w_cls, b_cls)
    assert emb.shape == (B, E) and logits.shape == (B, T) and pred.shape == (B, T)
    # Embeddings use the f32 fused-pool matmul path.
    assert jnp.allclose(emb, r_emb, atol=1e-3, rtol=1e-3)
    # Logits/preds stream W_c/b_c in bf16 (f32 accumulation); tolerance covers
    # the ~2^-9 relative weight rounding at K=32 plus MXU accumulation order.
    assert jnp.allclose(logits, r_logits, atol=2e-3, rtol=2e-3)
    assert jnp.allclose(pred, r_pred, atol=2e-3, rtol=2e-3)

    print("KERNEL_OK")
</pallas_src>

<mosaic_0001>
module attributes {stable_mosaic.version = 11 : i64} {
  func.func @_initial_head_kernel(%arg0: i32, %arg1: i32, %arg2: i32, %arg3: memref<2x1024xf32, #tpu.memory_space<vmem>>, %arg4: memref<1024x32xf32, #tpu.memory_space<vmem>>, %arg5: memref<1x32xf32, #tpu.memory_space<vmem>>, %arg6: memref<32x128xbf16, #tpu.memory_space<vmem>>, %arg7: memref<1x128xbf16, #tpu.memory_space<vmem>>, %arg8: memref<1x2x32xf32, #tpu.memory_space<vmem>>, %arg9: memref<2x128xf32, #tpu.memory_space<vmem>>, %arg10: memref<2x128xf32, #tpu.memory_space<vmem>>, %arg11: memref<2x32xf32, #tpu.memory_space<vmem>>) attributes {dimension_semantics = [#tpu.dimension_semantics<parallel>, #tpu.dimension_semantics<parallel>, #tpu.dimension_semantics<arbitrary>], iteration_bounds = array<i64: 1, 1, 1>, scalar_prefetch = 0 : i64, scratch_operands = 1 : i64, tpu.core_type = #tpu.core_type<tc>, window_params = [{transform_indices = @transform_0, window_bounds = array<i64: 2, 1024>}, {pipeline_mode = #tpu.pipeline_mode<synchronous>, transform_indices = @transform_1, window_bounds = array<i64: 1024, 32>}, {pipeline_mode = #tpu.pipeline_mode<synchronous>, transform_indices = @transform_2, window_bounds = array<i64: 1, 32>}, {transform_indices = @transform_3, window_bounds = array<i64: 32, 128>}, {transform_indices = @transform_4, window_bounds = array<i64: 1, 128>}, {transform_indices = @transform_5, window_bounds = array<i64: 1, 2, 32>}, {transform_indices = @transform_6, window_bounds = array<i64: 2, 128>}, {transform_indices = @transform_7, window_bounds = array<i64: 2, 128>}]} {
    %c0_i32 = arith.constant 0 : i32
    %0 = arith.cmpi eq, %arg2, %c0_i32 : i32
    %1 = arith.extui %0 : i1 to i32
    %c0_i32_0 = arith.constant 0 : i32
    %2 = arith.cmpi ne, %1, %c0_i32_0 : i32
    scf.if %2 {
      %c0_13 = arith.constant 0 : index
      %c0_14 = arith.constant 0 : index
      %20 = vector.load %arg3[%c0_13, %c0_14] : memref<2x1024xf32, #tpu.memory_space<vmem>>, vector<2x1024xf32>
      %c0_15 = arith.constant 0 : index
      %c0_16 = arith.constant 0 : index
      %21 = vector.load %arg4[%c0_15, %c0_16] : memref<1024x32xf32, #tpu.memory_space<vmem>>, vector<1024x32xf32>
      %cst_17 = arith.constant dense<0.000000e+00> : vector<2x32xf32>
      %22 = tpu.matmul %20, %21, %cst_17 {dimension_numbers = #tpu.dot_dimension_numbers<[1], [0], [0], [1], [0, 0, 1, 1], [], []>} : vector<2x1024xf32>, vector<1024x32xf32>, vector<2x32xf32> -> vector<2x32xf32>
      %c0_18 = arith.constant 0 : index
      %c0_19 = arith.constant 0 : index
      %23 = vector.load %arg5[%c0_18, %c0_19] : memref<1x32xf32, #tpu.memory_space<vmem>>, vector<1x32xf32>
      %24 = vector.broadcast %23 : vector<1x32xf32> to vector<2x32xf32>
      %25 = arith.addf %22, %24 : vector<2x32xf32>
      %c0_20 = arith.constant 0 : index
      %c0_21 = arith.constant 0 : index
      %26 = vector.load %arg11[%c0_20, %c0_21] : memref<2x32xf32, #tpu.memory_space<vmem>>, vector<2x32xf32>
      tpu.vector_store %arg11[%c0_20, %c0_21], %25 {strides = array<i32>} : memref<2x32xf32, #tpu.memory_space<vmem>>, vector<2x32xf32>,
      %27 = vector.shape_cast %25 : vector<2x32xf32> to vector<1x2x32xf32>
      %c0_22 = arith.constant 0 : index
      %c0_23 = arith.constant 0 : index
      %c0_24 = arith.constant 0 : index
      %28 = vector.load %arg8[%c0_22, %c0_23, %c0_24] : memref<1x2x32xf32, #tpu.memory_space<vmem>>, vector<1x2x32xf32>
      tpu.vector_store %arg8[%c0_22, %c0_23, %c0_24], %27 {strides = array<i32>} : memref<1x2x32xf32, #tpu.memory_space<vmem>>, vector<1x2x32xf32>,
    } else {
    }
    %c0 = arith.constant 0 : index
    %c0_1 = arith.constant 0 : index
    %3 = vector.load %arg11[%c0, %c0_1] : memref<2x32xf32, #tpu.memory_space<vmem>>, vector<2x32xf32>
    %4 = arith.truncf %3 : vector<2x32xf32> to vector<2x32xbf16>
    %c0_2 = arith.constant 0 : index
    %c0_3 = arith.constant 0 : index
    %5 = vector.load %arg6[%c0_2, %c0_3] : memref<32x128xbf16, #tpu.memory_space<vmem>>, vector<32x128xbf16>
    %cst = arith.constant dense<0.000000e+00> : vector<2x128xf32>
    %6 = tpu.matmul %4, %5, %cst {dimension_numbers = #tpu.dot_dimension_numbers<[1], [0], [0], [1], [0, 0, 1, 1], [], []>} : vector<2x32xbf16>, vector<32x128xbf16>, vector<2x128xf32> -> vector<2x128xf32>
    %c0_4 = arith.constant 0 : index
    %c0_5 = arith.constant 0 : index
    %7 = vector.load %arg7[%c0_4, %c0_5] : memref<1x128xbf16, #tpu.memory_space<vmem>>, vector<1x128xbf16>
    %8 = arith.extf %7 : vector<1x128xbf16> to vector<1x128xf32>
    %9 = vector.broadcast %8 : vector<1x128xf32> to vector<2x128xf32>
    %10 = arith.addf %6, %9 : vector<2x128xf32>
    %c0_6 = arith.constant 0 : index
    %c0_7 = arith.constant 0 : index
    %11 = vector.load %arg9[%c0_6, %c0_7] : memref<2x128xf32, #tpu.memory_space<vmem>>, vector<2x128xf32>
    tpu.vector_store %arg9[%c0_6, %c0_7], %10 {strides = array<i32>} : memref<2x128xf32, #tpu.memory_space<vmem>>, vector<2x128xf32>,
    %cst_8 = arith.constant 5.000000e-01 : f32
    %12 = vector.broadcast %cst_8 : f32 to vector<2x128xf32>
    %13 = arith.mulf %12, %10 : vector<2x128xf32>
    %14 = math.tanh %13 : vector<2x128xf32>
    %cst_9 = arith.constant 1.000000e+00 : f32
    %15 = vector.broadcast %cst_9 : f32 to vector<2x128xf32>
    %16 = arith.addf %14, %15 : vector<2x128xf32>
    %cst_10 = arith.constant 5.000000e-01 : f32
    %17 = vector.broadcast %cst_10 : f32 to vector<2x128xf32>
    %18 = arith.mulf %17, %16 : vector<2x128xf32>
    %c0_11 = arith.constant 0 : index
    %c0_12 = arith.constant 0 : index
    %19 = vector.load %arg10[%c0_11, %c0_12] : memref<2x128xf32, #tpu.memory_space<vmem>>, vector<2x128xf32>
    tpu.vector_store %arg10[%c0_11, %c0_12], %18 {strides = array<i32>} : memref<2x128xf32, #tpu.memory_space<vmem>>, vector<2x128xf32>,
    return
  }
  func.func @transform_0(%arg0: i32, %arg1: i32, %arg2: i32) -> (i32, i32) {
    %c0_i32 = arith.constant 0 : i32
    %c0_i32_0 = arith.constant 0 : i32
    return %arg0, %c0_i32 : i32, i32
  }
  func.func @transform_1(%arg0: i32, %arg1: i32, %arg2: i32) -> (i32, i32) {
    %c0_i32 = arith.constant 0 : i32
    %c0_i32_0 = arith.constant 0 : i32
    %c0_i32_1 = arith.constant 0 : i32
    return %c0_i32, %c0_i32_0 : i32, i32
  }
  func.func @transform_2(%arg0: i32, %arg1: i32, %arg2: i32) -> (i32, i32) {
    %c0_i32 = arith.constant 0 : i32
    %c0_i32_0 = arith.constant 0 : i32
    %c0_i32_1 = arith.constant 0 : i32
    return %c0_i32, %c0_i32_0 : i32, i32
  }
  func.func @transform_3(%arg0: i32, %arg1: i32, %arg2: i32) -> (i32, i32) {
    %c1_i32 = arith.constant 1 : i32
    %0 = arith.muli %arg1, %c1_i32 : i32
    %1 = arith.addi %0, %arg2 : i32
    %c0_i32 = arith.constant 0 : i32
    %c0_i32_0 = arith.constant 0 : i32
    return %c0_i32, %1 : i32, i32
  }
  func.func @transform_4(%arg0: i32, %arg1: i32, %arg2: i32) -> (i32, i32) {
    %c1_i32 = arith.constant 1 : i32
    %0 = arith.muli %arg1, %c1_i32 : i32
    %1 = arith.addi %0, %arg2 : i32
    %c0_i32 = arith.constant 0 : i32
    %c0_i32_0 = arith.constant 0 : i32
    return %c0_i32, %1 : i32, i32
  }
  func.func @transform_5(%arg0: i32, %arg1: i32, %arg2: i32) -> (i32, i32, i32) {
    %c0_i32 = arith.constant 0 : i32
    %c0_i32_0 = arith.constant 0 : i32
    return %arg1, %arg0, %c0_i32 : i32, i32, i32
  }
  func.func @transform_6(%arg0: i32, %arg1: i32, %arg2: i32) -> (i32, i32) {
    %c1_i32 = arith.constant 1 : i32
    %0 = arith.muli %arg1, %c1_i32 : i32
    %1 = arith.addi %0, %arg2 : i32
    %c0_i32 = arith.constant 0 : i32
    return %arg0, %1 : i32, i32
  }
  func.func @transform_7(%arg0: i32, %arg1: i32, %arg2: i32) -> (i32, i32) {
    %c1_i32 = arith.constant 1 : i32
    %0 = arith.muli %arg1, %c1_i32 : i32
    %1 = arith.addi %0, %arg2 : i32
    %c0_i32 = arith.constant 0 : i32
    return %arg0, %1 : i32, i32
  }
}

</mosaic_0001>

<bundles_post_ra>
// kernel: forward.1
= control target key start
LH: loop header
LB: loop body
LE: loop exit
PB: predicated region body
PF: predicated region fallthrough
CT: control target
= control target key end

     0   :  { %13 = vsyncpa [#allocation4], 0  ;;  %s702_s0 = inlined_call_operand.vmem [shape: f32[2,1024], index: 0, kind: input, shape index: {}]   ;;  %s703_s1 = inlined_call_operand.hbm [shape: f32[1024,32], index: 1, kind: input, shape index: {}]   ;;  %s704_s2 = inlined_call_operand.vmem [shape: f32[1,32], index: 2, kind: input, shape index: {}]   ;;  %s705_s3 = inlined_call_operand.vmem [shape: bf16[32,128], index: 3, kind: input, shape index: {}]   ;;  %s706_s4 = inlined_call_operand.vmem [shape: bf16[1,128], index: 4, kind: input, shape index: {}]   ;;  %s707_s5 = inlined_call_operand.hbm [shape: f32[1,2,32], index: 5, kind: output, shape index: {0}]   ;;  %s708_s6 = inlined_call_operand.hbm [shape: f32[2,128], index: 6, kind: output, shape index: {1}]   ;;  %s709_s7 = inlined_call_operand.hbm [shape: f32[2,128], index: 7, kind: output, shape index: {2}]  }
   0x1   :  { %14 = vsyncpa [#allocation5], 0 }
   0x2   :  { %15 = vsyncpa [#allocation8], 0  ;;  %s22_s26 = sshll.u32 %s703_s1, 4  ;;  %s626_s27 = smov [#allocation3]   ;;  %s23_s26 = int_to_ptr.hbm [resolvable:$true] %s22_s26 }
   0x3   :  { %s24_s28 = sshll.u32 %s626_s27, 4  ;;  %s627_s29 = smov 128   ;;  %s25_s28 = int_to_ptr.vmem [resolvable:$true] %s24_s28 }
   0x4   :  { %s628_s30 = smov 8  }
   0x5   :  { %30 = dma.hbm_to_vmem [thread:$0]  %s23_s26, 16384, %s25_s28, [#allocation4], %s627_s29, %s627_s29, %s628_s30  }
   0x6   :  { %620 = dma.done.wait [#allocation4], 16384  }
   0x7   :  { %621 = vsyncadd [#allocation4], 4294950912  ;;  %v128_v0 = vld [vmem:[#allocation3 + $0x178] sm:$0xff]  ;;  %v127_v2 = vld [vmem:[#allocation3 + $0x170] sm:$0xff]  ;;  %vm394_vm0 = vcmask 254976   ;;  %vm418_vm1 = vcmask 261120  }
   0x8   :  { %v96_v1 = vld [vmem:[#allocation3 + $0x78] sm:$0xff]  ;;  %274 = vmatpush.msra.mxu2 %v128_v0  ;;  %v95_v4 = vld [vmem:[#allocation3 + $0x70] sm:$0xff]  ;;  %v126_v6 = vld [vmem:[#allocation3 + $0x168] sm:$0xff]  ;;  %s448_s16 = sshll.u32 %s707_s5, 4  ;;  %s629_s17 = smov [#allocation6]   ;;  %s449_s16 = int_to_ptr.hbm [resolvable:$true] %s448_s16 }
   0x9   :  { %234 = vmatpush.msra.mxu0 %v96_v1  ;;  %v144_v3 = vld [vmem:[#allocation3 + $0x1f8] sm:$0xff]  ;;  %v143_v7 = vld [vmem:[#allocation3 + $0x1f0] sm:$0xff]  ;;  %v94_v8 = vld [vmem:[#allocation3 + $0x68] sm:$0xff]  ;;  %s446_s18 = sshll.u32 %s629_s17, 4  ;;  %s630_s21 = smov [#allocation7]   ;;  %s447_s18 = int_to_ptr.vmem [resolvable:$true] %s446_s18 }
   0xa   :  { %v112_v5 = vld [vmem:[#allocation3 + $0xf8] sm:$0xff]  ;;  %294 = vmatpush.msra.mxu3 %v144_v3  ;;  %275 = vmatpush.msra.mxu2 %v127_v2  ;;  %v111_v9 = vld [vmem:[#allocation3 + $0xf0] sm:$0xff]  ;;  %v142_v10 = vld [vmem:[#allocation3 + $0x1e8] sm:$0xff]  ;;  %s460_s22 = sshll.u32 %s630_s21, 4  ;;  %s462_s25 = sshll.u32 %s708_s6, 4  ;;  %s461_s22 = int_to_ptr.vmem [resolvable:$true] %s460_s22  ;;  %s463_s25 = int_to_ptr.hbm [resolvable:$true] %s462_s25 }
   0xb   :  { %254 = vmatpush.msra.mxu1 %v112_v5  ;;  %235 = vmatpush.msra.mxu0 %v95_v4  ;;  %v125_v11 = vld [vmem:[#allocation3 + $0x160] sm:$0xff]  ;;  %v110_v13 = vld [vmem:[#allocation3 + $0xe8] sm:$0xff]  ;;  %v124_v16 = vld [vmem:[#allocation3 + $0x158] sm:$0xff]  ;;  %s631_s5 = smov [#allocation9]   ;;  %s476_s28 = sshll.u32 %s709_s7, 4  ;;  %s477_s28 = int_to_ptr.hbm [resolvable:$true] %s476_s28 }
   0xc   :  { %295 = vmatpush.msra.mxu3 %v143_v7  ;;  %v93_v12 = vld [vmem:[#allocation3 + $0x60] sm:$0xff]  ;;  %276 = vmatpush.msra.mxu2 %v126_v6  ;;  %v92_v17 = vld [vmem:[#allocation3 + $0x58] sm:$0xff]  ;;  %v123_v20 = vld [vmem:[#allocation3 + $0x150] sm:$0xff] }
   0xd   :  { %255 = vmatpush.msra.mxu1 %v111_v9  ;;  %236 = vmatpush.msra.mxu0 %v94_v8  ;;  %v141_v14 = vld [vmem:[#allocation3 + $0x1e0] sm:$0xff]  ;;  %v140_v18 = vld [vmem:[#allocation3 + $0x1d8] sm:$0xff]  ;;  %v91_v21 = vld [vmem:[#allocation3 + $0x50] sm:$0xff] }
   0xe   :  { %v109_v15 = vld [vmem:[#allocation3 + $0xe0] sm:$0xff]  ;;  %296 = vmatpush.msra.mxu3 %v142_v10  ;;  %277 = vmatpush.msra.mxu2 %v125_v11  ;;  %v108_v19 = vld [vmem:[#allocation3 + $0xd8] sm:$0xff]  ;;  %v139_v22 = vld [vmem:[#allocation3 + $0x1d0] sm:$0xff] }
   0xf   :  { %256 = vmatpush.msra.mxu1 %v110_v13  ;;  %237 = vmatpush.msra.mxu0 %v93_v12  ;;  %v107_v23 = vld [vmem:[#allocation3 + $0xd0] sm:$0xff]  ;;  %v122_v24 = vld [vmem:[#allocation3 + $0x148] sm:$0xff]  ;;  %v121_v28 = vld [vmem:[#allocation3 + $0x140] sm:$0xff] }
  0x10   :  { %297 = vmatpush.msra.mxu3 %v141_v14  ;;  %278 = vmatpush.msra.mxu2 %v124_v16  ;;  %v90_v25 = vld [vmem:[#allocation3 + $0x48] sm:$0xff]  ;;  %v89_v29 = vld [vmem:[#allocation3 + $0x40] sm:$0xff]  ;;  %v120_v32 = vld [vmem:[#allocation3 + $0x138] sm:$0xff] }
  0x11   :  { %257 = vmatpush.msra.mxu1 %v109_v15  ;;  %238 = vmatpush.msra.mxu0 %v92_v17  ;;  %v138_v26 = vld [vmem:[#allocation3 + $0x1c8] sm:$0xff]  ;;  %v137_v30 = vld [vmem:[#allocation3 + $0x1c0] sm:$0xff]  ;;  %v88_v33 = vld [vmem:[#allocation3 + $0x38] sm:$0xff] }
  0x12   :  { %298 = vmatpush.msra.mxu3 %v140_v18  ;;  %279 = vmatpush.msra.mxu2 %v123_v20  ;;  %v106_v27 = vld [vmem:[#allocation3 + $0xc8] sm:$0xff]  ;;  %v105_v31 = vld [vmem:[#allocation3 + $0xc0] sm:$0xff]  ;;  %v136_v34 = vld [vmem:[#allocation3 + $0x1b8] sm:$0xff] }
  0x13   :  { %258 = vmatpush.msra.mxu1 %v108_v19  ;;  %239 = vmatpush.msra.mxu0 %v91_v21  ;;  %v104_v35 = vld [vmem:[#allocation3 + $0xb8] sm:$0xff]  ;;  %v119_v36 = vld [vmem:[#allocation3 + $0x130] sm:$0xff]  ;;  %v118_v40 = vld [vmem:[#allocation3 + $0x128] sm:$0xff] }
  0x14   :  { %299 = vmatpush.msra.mxu3 %v139_v22  ;;  %280 = vmatpush.msra.mxu2 %v122_v24  ;;  %v87_v37 = vld [vmem:[#allocation3 + $0x30] sm:$0xff]  ;;  %v86_v41 = vld [vmem:[#allocation3 + $0x28] sm:$0xff]  ;;  %v117_v44 = vld [vmem:[#allocation3 + $0x120] sm:$0xff] }
  0x15   :  { %259 = vmatpush.msra.mxu1 %v107_v23  ;;  %240 = vmatpush.msra.mxu0 %v90_v25  ;;  %v135_v38 = vld [vmem:[#allocation3 + $0x1b0] sm:$0xff]  ;;  %v134_v42 = vld [vmem:[#allocation3 + $0x1a8] sm:$0xff]  ;;  %v85_v45 = vld [vmem:[#allocation3 + $0x20] sm:$0xff] }
  0x16   :  { %300 = vmatpush.msra.mxu3 %v138_v26  ;;  %281 = vmatpush.msra.mxu2 %v121_v28  ;;  %v103_v39 = vld [vmem:[#allocation3 + $0xb0] sm:$0xff]  ;;  %v102_v43 = vld [vmem:[#allocation3 + $0xa8] sm:$0xff]  ;;  %v133_v46 = vld [vmem:[#allocation3 + $0x1a0] sm:$0xff] }
  0x17   :  { %260 = vmatpush.msra.mxu1 %v106_v27  ;;  %241 = vmatpush.msra.mxu0 %v89_v29  ;;  %v101_v47 = vld [vmem:[#allocation3 + $0xa0] sm:$0xff]  ;;  %v116_v48 = vld [vmem:[#allocation3 + $0x118] sm:$0xff]  ;;  %v115_v52 = vld [vmem:[#allocation3 + $0x110] sm:$0xff] }
  0x18   :  { %301 = vmatpush.msra.mxu3 %v137_v30  ;;  %282 = vmatpush.msra.mxu2 %v120_v32  ;;  %v84_v49 = vld [vmem:[#allocation3 + $0x18] sm:$0xff]  ;;  %v83_v53 = vld [vmem:[#allocation3 + $0x10] sm:$0xff]  ;;  %v114_v56 = vld [vmem:[#allocation3 + $0x108] sm:$0xff] }
  0x19   :  { %261 = vmatpush.msra.mxu1 %v105_v31  ;;  %242 = vmatpush.msra.mxu0 %v88_v33  ;;  %v132_v50 = vld [vmem:[#allocation3 + $0x198] sm:$0xff]  ;;  %v131_v54 = vld [vmem:[#allocation3 + $0x190] sm:$0xff]  ;;  %v82_v57 = vld [vmem:[#allocation3 + $0x8] sm:$0xff] }
  0x1a   :  { %302 = vmatpush.msra.mxu3 %v136_v34  ;;  %283 = vmatpush.msra.mxu2 %v119_v36  ;;  %v100_v51 = vld [vmem:[#allocation3 + $0x98] sm:$0xff]  ;;  %v99_v55 = vld [vmem:[#allocation3 + $0x90] sm:$0xff]  ;;  %v130_v58 = vld [vmem:[#allocation3 + $0x188] sm:$0xff] }
  0x1b   :  { %262 = vmatpush.msra.mxu1 %v104_v35  ;;  %243 = vmatpush.msra.mxu0 %v87_v37  ;;  %v98_v59 = vld [vmem:[#allocation3 + $0x88] sm:$0xff]  ;;  %v113_v60 = vld [vmem:[#allocation3 + $0x100] sm:$0xff]  ;;  %v192_v62 = vld [vmem:[#allocation3 + $0x378] sm:$0xff] }
  0x1c   :  { %303 = vmatpush.msra.mxu3 %v135_v38  ;;  %284 = vmatpush.msra.mxu2 %v118_v40  ;;  %v81_v61 = vld [vmem:[#allocation3] sm:$0xff]  ;;  %v160_v0 = vld [vmem:[#allocation3 + $0x278] sm:$0xff]  ;;  %v191_v2 = vld [vmem:[#allocation3 + $0x370] sm:$0xff] }
  0x1d   :  { %263 = vmatpush.msra.mxu1 %v103_v39  ;;  %244 = vmatpush.msra.mxu0 %v86_v41  ;;  %v129_v63 = vld [vmem:[#allocation3 + $0x180] sm:$0xff]  ;;  %v208_v1 = vld [vmem:[#allocation3 + $0x3f8] sm:$0xff]  ;;  %v159_v4 = vld [vmem:[#allocation3 + $0x270] sm:$0xff] }
  0x1e   :  { %304 = vmatpush.msra.mxu3 %v134_v42  ;;  %285 = vmatpush.msra.mxu2 %v117_v44  ;;  %v97_v3 = vld [vmem:[#allocation3 + $0x80] sm:$0xff]  ;;  %v176_v5 = vld [vmem:[#allocation3 + $0x2f8] sm:$0xff]  ;;  %v190_v6 = vld [vmem:[#allocation3 + $0x368] sm:$0xff] }
  0x1f   :  { %264 = vmatpush.msra.mxu1 %v102_v43  ;;  %245 = vmatpush.msra.mxu0 %v85_v45  ;;  %v207_v7 = vld [vmem:[#allocation3 + $0x3f0] sm:$0xff]  ;;  %v158_v8 = vld [vmem:[#allocation3 + $0x268] sm:$0xff]  ;;  %v189_v10 = vld [vmem:[#allocation3 + $0x360] sm:$0xff] }
  0x20   :  { %305 = vmatpush.msra.mxu3 %v133_v46  ;;  %286 = vmatpush.msra.mxu2 %v116_v48  ;;  %v175_v9 = vld [vmem:[#allocation3 + $0x2f0] sm:$0xff]  ;;  %v206_v11 = vld [vmem:[#allocation3 + $0x3e8] sm:$0xff]  ;;  %v157_v12 = vld [vmem:[#allocation3 + $0x260] sm:$0xff] }
  0x21   :  { %265 = vmatpush.msra.mxu1 %v101_v47  ;;  %246 = vmatpush.msra.mxu0 %v84_v49  ;;  %v174_v13 = vld [vmem:[#allocation3 + $0x2e8] sm:$0xff]  ;;  %v79_v14 = vld [vmem:[%s702_s0] sm:$0xff]  ;;  %v205_v16 = vld [vmem:[#allocation3 + $0x3e0] sm:$0xff] }
  0x22   :  { %306 = vmatpush.msra.mxu3 %v132_v50  ;;  %287 = vmatpush.msra.mxu2 %v115_v52  ;;  %v188_v15 = vld [vmem:[#allocation3 + $0x358] sm:$0xff]  ;;  %215 = vst [vmem:[#allocation1] ss:$4 sm:$0xff] %v79_v14  ;;  %v173_v18 = vld [vmem:[#allocation3 + $0x2e0] sm:$0xff]  ;;  %v187_v19 = vld [vmem:[#allocation3 + $0x350] sm:$0xff] }
  0x23   :  { %266 = vmatpush.msra.mxu1 %v100_v51  ;;  %247 = vmatpush.msra.mxu0 %v83_v53  ;;  %v156_v17 = vld [vmem:[#allocation3 + $0x258] sm:$0xff]  ;;  %v155_v21 = vld [vmem:[#allocation3 + $0x250] sm:$0xff]  ;;  %v186_v23 = vld [vmem:[#allocation3 + $0x348] sm:$0xff] }
  0x24   :  { %307 = vmatpush.msra.mxu3 %v131_v54  ;;  %288 = vmatpush.msra.mxu2 %v114_v56  ;;  %v204_v20 = vld [vmem:[#allocation3 + $0x3d8] sm:$0xff]  ;;  %v203_v24 = vld [vmem:[#allocation3 + $0x3d0] sm:$0xff]  ;;  %v154_v26 = vld [vmem:[#allocation3 + $0x248] sm:$0xff] }
  0x25   :  { %267 = vmatpush.msra.mxu1 %v99_v55  ;;  %248 = vmatpush.msra.mxu0 %v82_v57  ;;  %v172_v22 = vld [vmem:[#allocation3 + $0x2d8] sm:$0xff]  ;;  %v171_v27 = vld [vmem:[#allocation3 + $0x2d0] sm:$0xff]  ;;  %v185_v28 = vld [vmem:[#allocation3 + $0x340] sm:$0xff] }
  0x26   :  { %308 = vmatpush.msra.mxu3 %v130_v58  ;;  %289 = vmatpush.msra.mxu2 %v113_v60  ;;  %v80_v25 = vld [vmem:[%s702_s0 + $0x8] sm:$0xff]  ;;  %v202_v29 = vld [vmem:[#allocation3 + $0x3c8] sm:$0xff]  ;;  %v183_v36 = vld [vmem:[#allocation3 + $0x330] sm:$0xff] }
  0x27   :  { %268 = vmatpush.msra.mxu1 %v98_v59  ;;  %249 = vmatpush.msra.mxu0 %v81_v61  ;;  %217 = vst [vmem:[#allocation1 + $0x20] ss:$4 sm:$0xff] %v80_v25  ;;  %v153_v30 = vld [vmem:[#allocation3 + $0x240] sm:$0xff]  ;;  %v170_v31 = vld [vmem:[#allocation3 + $0x2c8] sm:$0xff]  ;;  %v184_v32 = vld [vmem:[#allocation3 + $0x338] sm:$0xff] }
  0x28   :  { %354 = vmatpush.msrb.mxu2 %v192_v62  ;;  %309 = vmatpush.msra.mxu3 %v129_v63  ;;  %v201_v33 = vld [vmem:[#allocation3 + $0x3c0] sm:$0xff]  ;;  %v152_v34 = vld [vmem:[#allocation3 + $0x238] sm:$0xff]  ;;  %v151_v38 = vld [vmem:[#allocation3 + $0x230] sm:$0xff] }
  0x29   :  { %314 = vmatpush.msrb.mxu0 %v160_v0  ;;  %269 = vmatpush.msra.mxu1 %v97_v3  ;;  %v169_v35 = vld [vmem:[#allocation3 + $0x2c0] sm:$0xff]  ;;  %v200_v37 = vld [vmem:[#allocation3 + $0x3b8] sm:$0xff]  ;;  %v182_v40 = vld [vmem:[#allocation3 + $0x328] sm:$0xff] }
  0x2a   :  { %374 = vmatpush.msrb.mxu3 %v208_v1  ;;  %355 = vmatpush.msrb.mxu2 %v191_v2  ;;  %v168_v39 = vld [vmem:[#allocation3 + $0x2b8] sm:$0xff]  ;;  %v199_v41 = vld [vmem:[#allocation3 + $0x3b0] sm:$0xff]  ;;  %v150_v42 = vld [vmem:[#allocation3 + $0x228] sm:$0xff] }
  0x2b   :  { %315 = vmatpush.msrb.mxu0 %v159_v4  ;;  %334 = vmatpush.msrb.mxu1 %v176_v5  ;;  %v167_v43 = vld [vmem:[#allocation3 + $0x2b0] sm:$0xff]  ;;  %v181_v44 = vld [vmem:[#allocation3 + $0x320] sm:$0xff]  ;;  %v198_v45 = vld [vmem:[#allocation3 + $0x3a8] sm:$0xff] }
  0x2c   :  { %356 = vmatpush.msrb.mxu2 %v190_v6  ;;  %375 = vmatpush.msrb.mxu3 %v207_v7  ;;  %v220_v46 = vld.sshfl [vmem:[#allocation1 + $0x10] sm:$0xff pattern:$0x73625140]  ;;  %v180_v49 = vld [vmem:[#allocation3 + $0x318] sm:$0xff]  ;;  %v179_v55 = vld [vmem:[#allocation3 + $0x310] sm:$0xff] }
  0x2d   :  { %316 = vmatpush.msrb.mxu0 %v158_v8  ;;  %335 = vmatpush.msrb.mxu1 %v175_v9  ;;  %v149_v47 = vld [vmem:[#allocation3 + $0x220] sm:$0xff]  ;;  %v166_v48 = vld [vmem:[#allocation3 + $0x2a8] sm:$0xff]  ;;  %v218_v51 = vld.sshfl [vmem:[#allocation1] sm:$0xff pattern:$0x73625140] }
  0x2e   :  { %357 = vmatpush.msrb.mxu2 %v189_v10  ;;  %376 = vmatpush.msrb.mxu3 %v206_v11  ;;  %v197_v50 = vld [vmem:[#allocation3 + $0x3a0] sm:$0xff]  ;;  %v221_v52 = vld.sshfl [vmem:[#allocation1 + $0x18] sm:$0xff pattern:$0x73625140]  ;;  %v148_v53 = vld [vmem:[#allocation3 + $0x218] sm:$0xff] }
  0x2f   :  { %317 = vmatpush.msrb.mxu0 %v157_v12  ;;  %336 = vmatpush.msrb.mxu1 %v174_v13  ;;  %v165_v54 = vld [vmem:[#allocation3 + $0x2a0] sm:$0xff]  ;;  %v196_v56 = vld [vmem:[#allocation3 + $0x398] sm:$0xff]  ;;  %v147_v58 = vld [vmem:[#allocation3 + $0x210] sm:$0xff] }
  0x30   :  { %358 = vmatpush.msrb.mxu2 %v188_v15  ;;  %377 = vmatpush.msrb.mxu3 %v205_v16  ;;  %v219_v57 = vld.sshfl [vmem:[#allocation1 + $0x8] sm:$0xff pattern:$0x73625140]  ;;  %v178_v60 = vld [vmem:[#allocation3 + $0x308] sm:$0xff]  ;;  %v195_v61 = vld [vmem:[#allocation3 + $0x390] sm:$0xff] }
  0x31   :  { %318 = vmatpush.msrb.mxu0 %v156_v17  ;;  %337 = vmatpush.msrb.mxu1 %v173_v18  ;;  %v164_v59 = vld [vmem:[#allocation3 + $0x298] sm:$0xff]  ;;  %v146_v62 = vld [vmem:[#allocation3 + $0x208] sm:$0xff]  ;;  %v163_v63 = vld [vmem:[#allocation3 + $0x290] sm:$0xff] }
  0x32   :  { %359 = vmatpush.msrb.mxu2 %v187_v19  ;;  %378 = vmatpush.msrb.mxu3 %v204_v20  ;;  %v177_v0 = vld [vmem:[#allocation3 + $0x300] sm:$0xff]  ;;  %v194_v1 = vld [vmem:[#allocation3 + $0x388] sm:$0xff]  ;;  %v222_v6 = vld.sshfl [vmem:[#allocation1 + $0x20] sm:$0xff pattern:$0x73625140] }
  0x33   :  { %319 = vmatpush.msrb.mxu0 %v155_v21  ;;  %338 = vmatpush.msrb.mxu1 %v172_v22  ;;  %v224_v2 = vld.sshfl [vmem:[#allocation1 + $0x30] sm:$0xff pattern:$0x73625140]  ;;  %v225_v7 = vld.sshfl [vmem:[#allocation1 + $0x38] sm:$0xff pattern:$0x73625140] }
  0x34   :  { %360 = vmatpush.msrb.mxu2 %v186_v23  ;;  %379 = vmatpush.msrb.mxu3 %v203_v24  ;;  %v145_v3 = vld [vmem:[#allocation3 + $0x200] sm:$0xff]  ;;  %v162_v4 = vld [vmem:[#allocation3 + $0x288] sm:$0xff]  ;;  %v513_v11 = vld [vmem:[%s705_s3] sm:$0xff] }
  0x35   :  { %320 = vmatpush.msrb.mxu0 %v154_v26  ;;  %339 = vmatpush.msrb.mxu1 %v171_v27  ;;  %v193_v5 = vld [vmem:[#allocation3 + $0x380] sm:$0xff]  ;;  %v521_v12 = vld [vmem:[%s704_s2] ss:$0 sm:$0xff] }
  0x36   :  { %361 = vmatpush.msrb.mxu2 %v185_v28  ;;  %380 = vmatpush.msrb.mxu3 %v202_v29  ;;  %v161_v8 = vld [vmem:[#allocation3 + $0x280] sm:$0xff] }
  0x37   :  { %321 = vmatpush.msrb.mxu0 %v153_v30  ;;  %340 = vmatpush.msrb.mxu1 %v170_v31  ;;  %v223_v9 = vld.sshfl [vmem:[#allocation1 + $0x28] sm:$0xff pattern:$0x73625140]  ;;  %v403_v31 = vld [vmem:[%s706_s4] sm:$0x1]  ;;  %s474_s4 = sshll.u32 %s631_s5, 4  ;;  %s475_s4 = int_to_ptr.vmem [resolvable:$true] %s474_s4 }
  0x38   :  { %362 = vmatpush.msrb.mxu2 %v184_v32  ;;  %381 = vmatpush.msrb.mxu3 %v201_v33  ;;  %v514_v10 = vld [vmem:[%s705_s3 + $0x8] sm:$0xff]  ;;  %v404_v32 = vunpack.c.l.bf16 %v403_v31 }
  0x39   :  { %322 = vmatpush.msrb.mxu0 %v152_v34  ;;  %341 = vmatpush.msrb.mxu1 %v169_v35 }
  0x3a   :  { %363 = vmatpush.msrb.mxu2 %v183_v36  ;;  %382 = vmatpush.msrb.mxu3 %v200_v37  ;;  %v405_v33 = vperm.slane %v404_v32, 0 }
  0x3b   :  { %323 = vmatpush.msrb.mxu0 %v151_v38  ;;  %342 = vmatpush.msrb.mxu1 %v168_v39 }
  0x3c   :  { %364 = vmatpush.msrb.mxu2 %v182_v40  ;;  %383 = vmatpush.msrb.mxu3 %v199_v41 }
  0x3d   :  { %324 = vmatpush.msrb.mxu0 %v150_v42  ;;  %343 = vmatpush.msrb.mxu1 %v167_v43 }
  0x3e   :  { %365 = vmatpush.msrb.mxu2 %v181_v44  ;;  %384 = vmatpush.msrb.mxu3 %v198_v45 }
  0x3f   :  { %290 = vmatmul.f32.vlgmr.msra.gmra.mxu2 %v220_v46  ;;  %325 = vmatpush.msrb.mxu0 %v149_v47 }
  0x40   :  { %344 = vmatpush.msrb.mxu1 %v166_v48  ;;  %366 = vmatpush.msrb.mxu2 %v180_v49 }
  0x41   :  { %385 = vmatpush.msrb.mxu3 %v197_v50  ;;  %250 = vmatmul.f32.vlgmr.msra.gmra.mxu0 %v218_v51 }
  0x42   :  { %310 = vmatmul.f32.vlgmr.msra.gmra.mxu3 %v221_v52  ;;  %326 = vmatpush.msrb.mxu0 %v148_v53 }
  0x43   :  { %345 = vmatpush.msrb.mxu1 %v165_v54  ;;  %367 = vmatpush.msrb.mxu2 %v179_v55 }
  0x44   :  { %386 = vmatpush.msrb.mxu3 %v196_v56  ;;  %270 = vmatmul.f32.vlgmr.msra.gmra.mxu1 %v219_v57 }
  0x45   :  { %327 = vmatpush.msrb.mxu0 %v147_v58  ;;  %346 = vmatpush.msrb.mxu1 %v164_v59 }
  0x46   :  { %368 = vmatpush.msrb.mxu2 %v178_v60  ;;  %387 = vmatpush.msrb.mxu3 %v195_v61 }
  0x47   :  { %328 = vmatpush.msrb.mxu0 %v146_v62  ;;  %347 = vmatpush.msrb.mxu1 %v163_v63 }
  0x48   :  { %369 = vmatpush.msrb.mxu2 %v177_v0  ;;  %388 = vmatpush.msrb.mxu3 %v194_v1 }
  0x49   :  { %370 = vmatmul.f32.vlgmr.msrb.gmra.mxu2 %v224_v2  ;;  %329 = vmatpush.msrb.mxu0 %v145_v3 }
  0x4a   :  { %348 = vmatpush.msrb.mxu1 %v162_v4  ;;  %389 = vmatpush.msrb.mxu3 %v193_v5 }
  0x4b   :  { %330 = vmatmul.f32.vlgmr.msrb.gmra.mxu0 %v222_v6  ;;  %390 = vmatmul.f32.vlgmr.msrb.gmra.mxu3 %v225_v7 }
  0x4c   :  { %349 = vmatpush.msrb.mxu1 %v161_v8  ;;  %428 = vmatpush.bf16.msra.mxu0 %v514_v10 }
  0x4d   :  { %350 = vmatmul.f32.vlgmr.msrb.gmra.mxu1 %v223_v9 }
  0x50   :  { %429 = vmatpush.bf16.msra.mxu0 %v513_v11 }
  0xbe   :  { %v251_v13 = vpop.f32.mrf.mxu0 }
  0xbf   :  { %v252_v14 = vadd.f32 %v521_v12, %v251_v13 }
  0xc1   :  { %v271_v15 = vpop.f32.mrf.mxu1 }
  0xc2   :  { %v272_v16 = vadd.f32 %v271_v15, %v252_v14  ;;  %v291_v17 = vpop.f32.mrf.mxu2 }
  0xc4   :  { %v292_v18 = vadd.f32 %v291_v17, %v272_v16 }
  0xc5   :  { %v311_v19 = vpop.f32.mrf.mxu3 }
  0xc6   :  { %v312_v20 = vadd.f32 %v311_v19, %v292_v18 }
  0xc8   :  { %v331_v21 = vpop.f32.mrf.mxu0 }
  0xc9   :  { %v332_v22 = vadd.f32 %v331_v21, %v312_v20 }
  0xca   :  { %v351_v23 = vpop.f32.mrf.mxu1 }
  0xcb   :  { %v352_v24 = vadd.f32 %v351_v23, %v332_v22 }
  0xcc   :  { %v371_v25 = vpop.f32.mrf.mxu2 }
  0xcd   :  { %v372_v26 = vadd.f32 %v371_v25, %v352_v24 }
  0xce   :  { %v391_v27 = vpop.f32.mrf.mxu3 }
  0xcf   :  { %v392_v28 = vadd.f32 %v391_v27, %v372_v26 }
  0xd1   :  { %395 = vst.msk [vmem:[#allocation2] sm:$0x3] %vm394_vm0, %v392_v28 }
  0xd2   :  { %396 = vst.msk [vmem:[#allocation6] sm:$0x3] %vm394_vm0, %v392_v28 }
  0xd3   :  { %451 = dma.vmem_to_hbm [thread:$0]  %s447_s18, 32, %s449_s16, [#allocation5]  }
  0xd8   :  { %v397_v29 = vld [vmem:[#allocation2] sm:$0x3] }
  0xd9   :  { %v398_v30 = vpack.c.bf16 %v397_v29, %v397_v29 }
  0xdb   :  { %512 = vmatmul.msk.bf16.vlgmr.msra.gmra.mxu0 %vm418_vm1, %v398_v30 }
 0x158   :  { %v431_v34 = vpop.f32.mrf.mxu0 }
 0x159   :  { %v432_v35 = vadd.f32 %v431_v34, %v405_v33 }
 0x15b   :  { %435 = vst [vmem:[#allocation7] sm:$0x3] %v432_v35  ;;  %v436_v36 = vmul.f32 0.5, %v432_v35 }
 0x15c   :  { %465 = dma.vmem_to_hbm [thread:$0]  %s461_s22, 32, %s463_s25, [#allocation8]  }
 0x15d   :  { %522 = vtanh.f32 %v436_v36 }
 0x160   :  { %v433_v37 = vpop.f32.mrf.mxu0 }
 0x163   :  { %v523_v38 = vpop.eup %522 }
 0x164   :  { %v438_v39 = vadd.f32 1.0, %v523_v38 }
 0x166   :  { %v439_v40 = vmul.f32 0.5, %v438_v39 }
 0x168   :  { %440 = vst [vmem:[#allocation9] sm:$0x3] %v439_v40 }
 0x169   :  { %479 = dma.vmem_to_hbm [thread:$0]  %s475_s4, 32, %s477_s28, [#allocation8]  }
 0x16a   :  { %622 = dma.done.wait [#allocation5], 32  }
 0x16b   :  { %623 = vsyncadd [#allocation5], 4294967264 }
 0x16c   :  { %624 = dma.done.wait [#allocation8], 64  }
 0x16d   :  { %625 = vsyncadd [#allocation8], 4294967232 }
 0x16e   :  { %492 = vsyncpa [#allocation4], 1 }
 0x16f   :  { %493 = vsyncpa [#allocation5], 1 }
 0x170   :  { %494 = vsyncpa [#allocation8], 1 }

</bundles_post_ra>
